<compile_context>
chip_gen: v7x
topology: tpu7x:2x2x1
jax: 0.10.0
libtpu: 0.0.40
codegen_flags: <defaults>
</compile_context>

<pallas_src>
import functools

import jax
import jax.numpy as jnp
from jax import lax
from jax.experimental import pallas as pl
from jax.experimental.pallas import tpu as pltpu


NUM_CLASSES = 5
_VMEM_LIMIT_BYTES = 32 * 1024 * 1024  # safe on v5e/v6e (128 MiB) and v7x (64 MiB)


def linear_kernel(x_ref, w_ref, b_ref, o_ref):
    # y_pred = x @ W + b   (MXU matmul, f32 accumulate)
    o_ref[...] = (
        jnp.dot(x_ref[...], w_ref[...], preferred_element_type=jnp.float32)
        + b_ref[...]
    ).astype(o_ref.dtype)


def linear_ce_kernel(x_ref, w_ref, b_ref, y_ref, loss_ref, *, batch, tile_b):
    # Fused linear + cross-entropy, accumulated across the batch grid axis.
    # Matches torch.nn.functional.cross_entropy with integer class targets
    # (mean reduction).
    i = pl.program_id(0)

    @pl.when(i == 0)
    def _():
        loss_ref[...] = jnp.zeros_like(loss_ref)

    logits = (
        jnp.dot(x_ref[...], w_ref[...], preferred_element_type=jnp.float32)
        + b_ref[...]
    )                                                            # (TB, C) f32
    m = jnp.max(logits, axis=-1, keepdims=True)                  # (TB, 1)
    z = logits - m
    lse = jnp.log(jnp.sum(jnp.exp(z), axis=-1, keepdims=True))   # (TB, 1)
    classes = lax.broadcasted_iota(jnp.int32, logits.shape, 1)   # (TB, C)
    # Labels stay as a (TB, 1) VMEM int32 tile: the one-hot compare needs a
    # vector read, which SMEM (scalar memory) cannot provide cheaply.
    onehot = (classes == y_ref[...]).astype(jnp.float32)         # (TB, C)
    true_logit = jnp.sum(z * onehot, axis=-1, keepdims=True)     # (TB, 1)
    nll = lse - true_logit                                       # (TB, 1)

    # Mask out rows of a ragged (partially out-of-bounds) last tile so
    # undefined padding data never reaches the accumulator.
    rows = i * tile_b + lax.broadcasted_iota(jnp.int32, nll.shape, 0)
    nll = jnp.where(rows < batch, nll, 0.0)

    loss_ref[...] += jnp.sum(nll, keepdims=True)                 # (1, 1)

    @pl.when(i == pl.num_programs(0) - 1)
    def _():
        loss_ref[...] = loss_ref[...] * (1.0 / batch)            # mean over B


def _pick_batch_tile(batch, block_b):
    """Pick a batch tile: full extent if it fits, else a multiple of 8."""
    if block_b is None:
        block_b = 512
    if batch <= block_b:
        return batch                      # full-extent block: any size allowed
    return max(8, (block_b // 8) * 8)     # tiled: sublane multiple of 8


def torch_model_forward(x, w, b, y=None, *, block_b=None):
    """Equivalent of TorchModel.forward.

    x: (B, D) f32, w: (D, 5) f32 (pre-transposed), b: (1, 5) f32,
    y: optional (B,) int32 class labels.
    Returns logits (B, 5) if y is None, else scalar mean cross-entropy loss.
    """
    B, D = x.shape
    C = w.shape[1]
    TB = _pick_batch_tile(B, block_b)
    nb = pl.cdiv(B, TB)

    if y is None:
        return pl.pallas_call(
            linear_kernel,
            out_shape=jax.ShapeDtypeStruct((B, C), jnp.float32),
            grid=(nb,),
            in_specs=[
                pl.BlockSpec((TB, D), lambda i: (i, 0)),   # x: tiled over batch
                pl.BlockSpec((D, C), lambda i: (0, 0)),    # W: VMEM-resident
                pl.BlockSpec((1, C), lambda i: (0, 0)),    # b: VMEM-resident
            ],
            out_specs=pl.BlockSpec((TB, C), lambda i: (i, 0)),
            compiler_params=pltpu.CompilerParams(
                dimension_semantics=("parallel",),   # v7x: shard batch over 2 TCs
                vmem_limit_bytes=_VMEM_LIMIT_BYTES,
            ),
        )(x, w, b)

    y2d = y.astype(jnp.int32).reshape(B, 1)
    loss = pl.pallas_call(
        functools.partial(linear_ce_kernel, batch=B, tile_b=TB),
        out_shape=jax.ShapeDtypeStruct((1, 1), jnp.float32),
        grid=(nb,),
        in_specs=[
            pl.BlockSpec((TB, D), lambda i: (i, 0)),
            pl.BlockSpec((D, C), lambda i: (0, 0)),
            pl.BlockSpec((1, C), lambda i: (0, 0)),
            pl.BlockSpec((TB, 1), lambda i: (i, 0)),
        ],
        # Output block resident across the whole grid -> accumulator;
        # the batch axis therefore must be "arbitrary".
        out_specs=pl.BlockSpec((1, 1), lambda i: (0, 0)),
        compiler_params=pltpu.CompilerParams(
            dimension_semantics=("arbitrary",),
            vmem_limit_bytes=_VMEM_LIMIT_BYTES,
        ),
    )(x, w, b, y2d)
    return loss[0, 0]


def reference_forward(x, w, b, y=None):
    logits = x @ w + b
    if y is None:
        return logits
    z = logits - jnp.max(logits, axis=-1, keepdims=True)
    logp = z - jnp.log(jnp.sum(jnp.exp(z), axis=-1, keepdims=True))
    nll = -jnp.take_along_axis(logp, y[:, None].astype(jnp.int32), axis=-1)
    return jnp.mean(nll)


if __name__ == "__main__":
    key = jax.random.PRNGKey(0)
    k_x, k_w, k_b, k_y = jax.random.split(key, 4)

    input_size = 32
    batch = 200  # deliberately not a multiple of the tile -> ragged last tile

    x = jax.random.normal(k_x, (batch, input_size), dtype=jnp.float32)
    # Deterministic "init" of nn.Linear(input_size, 5), stored pre-transposed.
    bound = 1.0 / (input_size ** 0.5)
    w = jax.random.uniform(
        k_w, (input_size, NUM_CLASSES), minval=-bound, maxval=bound,
        dtype=jnp.float32)
    b = jax.random.uniform(
        k_b, (1, NUM_CLASSES), minval=-bound, maxval=bound, dtype=jnp.float32)
    y = jax.random.randint(k_y, (batch,), 0, NUM_CLASSES, dtype=jnp.int32)

    # Gridded path: TB=128 -> grid of 2, second tile ragged (72 valid rows).
    logits = jax.block_until_ready(torch_model_forward(x, w, b, block_b=128))
    loss = jax.block_until_ready(torch_model_forward(x, w, b, y, block_b=128))

    ref_logits = reference_forward(x, w, b)
    ref_loss = reference_forward(x, w, b, y)

    assert logits.shape == (batch, NUM_CLASSES)
    assert jnp.allclose(logits, ref_logits, atol=1e-5, rtol=1e-5)
    assert jnp.allclose(loss, ref_loss, atol=1e-5, rtol=1e-5)

    # Small-batch path (single full-extent block), mirrors the original toy use.
    xs, ys = x[:8], y[:8]
    logits_s = jax.block_until_ready(torch_model_forward(xs, w, b))
    loss_s = jax.block_until_ready(torch_model_forward(xs, w, b, ys))
    assert jnp.allclose(logits_s, reference_forward(xs, w, b), atol=1e-5, rtol=1e-5)
    assert jnp.allclose(loss_s, reference_forward(xs, w, b, ys), atol=1e-5, rtol=1e-5)

    print("KERNEL_OK")
</pallas_src>

<mosaic_0001>
module attributes {stable_mosaic.version = 11 : i64} {
  func.func @linear_kernel(%arg0: i32, %arg1: memref<128x32xf32, #tpu.memory_space<vmem>>, %arg2: memref<32x5xf32, #tpu.memory_space<vmem>>, %arg3: memref<1x5xf32, #tpu.memory_space<vmem>>, %arg4: memref<128x5xf32, #tpu.memory_space<vmem>>) attributes {dimension_semantics = [#tpu.dimension_semantics<parallel>], iteration_bounds = array<i64: 2>, scalar_prefetch = 0 : i64, scratch_operands = 0 : i64, tpu.core_type = #tpu.core_type<tc>, window_params = [{transform_indices = @transform_0, window_bounds = array<i64: 128, 32>}, {pipeline_mode = #tpu.pipeline_mode<synchronous>, transform_indices = @transform_1, window_bounds = array<i64: 32, 5>}, {pipeline_mode = #tpu.pipeline_mode<synchronous>, transform_indices = @transform_2, window_bounds = array<i64: 1, 5>}, {transform_indices = @transform_3, window_bounds = array<i64: 128, 5>}]} {
    %c0 = arith.constant 0 : index
    %c0_0 = arith.constant 0 : index
    %0 = vector.load %arg1[%c0, %c0_0] : memref<128x32xf32, #tpu.memory_space<vmem>>, vector<128x32xf32>
    %c0_1 = arith.constant 0 : index
    %c0_2 = arith.constant 0 : index
    %1 = vector.load %arg2[%c0_1, %c0_2] : memref<32x5xf32, #tpu.memory_space<vmem>>, vector<32x5xf32>
    %cst = arith.constant dense<0.000000e+00> : vector<128x5xf32>
    %2 = tpu.matmul %0, %1, %cst {dimension_numbers = #tpu.dot_dimension_numbers<[1], [0], [0], [1], [0, 0, 1, 1], [], []>} : vector<128x32xf32>, vector<32x5xf32>, vector<128x5xf32> -> vector<128x5xf32>
    %c0_3 = arith.constant 0 : index
    %c0_4 = arith.constant 0 : index
    %3 = vector.load %arg3[%c0_3, %c0_4] : memref<1x5xf32, #tpu.memory_space<vmem>>, vector<1x5xf32>
    %4 = vector.broadcast %3 : vector<1x5xf32> to vector<128x5xf32>
    %5 = arith.addf %2, %4 : vector<128x5xf32>
    %c0_5 = arith.constant 0 : index
    %c0_6 = arith.constant 0 : index
    %6 = vector.load %arg4[%c0_5, %c0_6] : memref<128x5xf32, #tpu.memory_space<vmem>>, vector<128x5xf32>
    tpu.vector_store %arg4[%c0_5, %c0_6], %5 {strides = array<i32>} : memref<128x5xf32, #tpu.memory_space<vmem>>, vector<128x5xf32>,
    return
  }
  func.func @transform_0(%arg0: i32) -> (i32, i32) {
    %c0_i32 = arith.constant 0 : i32
    %c0_i32_0 = arith.constant 0 : i32
    return %arg0, %c0_i32 : i32, i32
  }
  func.func @transform_1(%arg0: i32) -> (i32, i32) {
    %c0_i32 = arith.constant 0 : i32
    %c0_i32_0 = arith.constant 0 : i32
    %c0_i32_1 = arith.constant 0 : i32
    return %c0_i32, %c0_i32_0 : i32, i32
  }
  func.func @transform_2(%arg0: i32) -> (i32, i32) {
    %c0_i32 = arith.constant 0 : i32
    %c0_i32_0 = arith.constant 0 : i32
    %c0_i32_1 = arith.constant 0 : i32
    return %c0_i32, %c0_i32_0 : i32, i32
  }
  func.func @transform_3(%arg0: i32) -> (i32, i32) {
    %c0_i32 = arith.constant 0 : i32
    %c0_i32_0 = arith.constant 0 : i32
    return %arg0, %c0_i32 : i32, i32
  }
}

</mosaic_0001>

<bundles_post_ra>
// kernel: tpu_custom_call.1
= control target key start
LH: loop header
LB: loop body
LE: loop exit
PB: predicated region body
PF: predicated region fallthrough
CT: control target
= control target key end

     0   :  { %s1009_s12 = smov 0   ;;  %s1011_s13 = smov 0   ;;  %s1230_s0 = inlined_call_operand.vmem [shape: f32[200,32], index: 0, kind: input, shape index: {}]   ;;  %s1231_s1 = inlined_call_operand.vmem [shape: f32[32,5], index: 1, kind: input, shape index: {}]   ;;  %s1232_s2 = inlined_call_operand.vmem [shape: f32[1,5], index: 2, kind: input, shape index: {}]   ;;  %s1233_s3 = inlined_call_operand.vmem [shape: f32[200,5], index: 3, kind: output, shape index: {}]  }
   0x1   :  { %s1013_s14 = smov 0  }
   0x2 LB: > { %s1022_s15 = sadd.s32 4294967295, %s955_s14   ;;  %s1024_s16 = sadd.s32 1, %s955_s14   ;;  %s955_s14 = sphi %s1013_s14, %s1240_s14   ;;  %s951_s13 = sphi %s1011_s13, %s1239_s13   ;;  %s947_s12 = sphi %s1009_s12, %s1238_s12  }
   0x3   : > { %s85_s17 = ssub.s32 %s955_s14, %s1024_s16  ;;  %s88_s18 = sadd.s32 1, %s951_s13 }
   0x4   : > { %p86_p0 = scmp.eq.s32.totalorder %s85_s17, 0  ;;  %p98_p1 = scmp.ne.s32.totalorder %s951_s13, %s947_s12 }
   0x5   : > { %p99_p2 = scmp.eq.s32.totalorder %s1022_s15, 1  ;;  %p708_p3 = scmp.ge.s32.totalorder %s955_s14, 1 }
   0x6   : > { %s1032_s19 = scalar_select %p86_p0, %s951_s13, %s88_s18  }
   0x7   : > { %p1034_p4 = por %p99_p2, %p98_p1  ;;  %p146_p5 = scmp.lt.s32.totalorder %s955_s14, 3 }
   0x9   : > { %p147_p6 = pnand %p708_p3, %p146_p5 }
   0xa   : > { %v208_v0 = vld [vmem:[%s1231_s1] sm:$0xff] (!%p147_p6)  ;;  %v209_v1 = vld [vmem:[%s1231_s1 + $0x8] sm:$0xff] (!%p147_p6)  ;;  %v210_v2 = vld [vmem:[%s1231_s1 + $0x10] sm:$0xff] (!%p147_p6)  ;;  %s1048_s27 = sshll.u32 (!%p147_p6), %s1022_s15, 4  ;;  %vm219_vm0 = vcmask (!%p147_p6), 261120   ;;  %s170_s8 = sand.u32 (!%p147_p6), 1, %s947_s12  }
   0xb   : > { %150 = sbr.rel (%p147_p6) target bundleno = 302 (0x12e), region = 32  ;;  %v801_v3 = vpack.c.bf16 (!%p147_p6), %v209_v1, %v208_v0  ;;  %v211_v4 = vld [vmem:[%s1231_s1 + $0x18] sm:$0xff] (!%p147_p6)  ;;  %p178_p7 = scmp.lt.s32.totalorder (!%p147_p6), %s1048_s27, 24  ;;  %v712_v22 = vld [vmem:[%s1232_s2] ss:$0 sm:$0xff] (!%p147_p6)  ;;  %vm413_vm1 = vcmask (!%p147_p6), 39936  }
   0xc   : > { %v805_v5 = vpack.c.bf16 (!%p147_p6), %v211_v4, %v210_v2  ;;  %s709_s9 = sshll.u32 (!%p147_p6), %s170_s8, 7 }
   0xd   : > { %802 = vmatprep.subr.bf16.mxu0 (!%p147_p6), %v801_v3  ;;  %809 = vmatprep.subr.bf16.mxu1 (!%p147_p6), %v801_v3  ;;  %s1096_s14 = scalar_lea.vmem (!%p147_p6), [#allocation2], %s709_s9  }
   0xe   : > { %804 = vmatpush3.bf16.msra.mxu0 (!%p147_p6), %v801_v3  ;;  %811 = vmatpush3.bf16.msra.mxu1 (!%p147_p6), %v801_v3 }
   0xf   : > { %806 = vmatprep.subr.bf16.mxu0 (!%p147_p6), %v805_v5  ;;  %810 = vmatprep.subr.bf16.mxu1 (!%p147_p6), %v805_v5 }
  0x12   : > { %s179_s30 = scalar_select %p178_p7, %s1048_s27, 24  ;;  %808 = vmatpush3.bf16.msra.mxu0 %v805_v5  ;;  %812 = vmatpush3.bf16.msra.mxu1 %v805_v5 }
  0x13   : > { %s438_s12 = ssub.s32 (%p1034_p4), 25, %s1048_s27  ;;  %s746_s17 = sshll.u32 (%p1034_p4), %s1022_s15, 7 }
  0x14   : > { %s711_s4 = sshll.u32 %s179_s30, 3  ;;  %p439_p8 = scmp.lt.s32.totalorder (%p1034_p4), %s438_s12, 16 }
  0x15   : > { %s1058_s7 = scalar_lea.vmem %s1230_s0, %s711_s4  ;;  %s1137_s22 = scalar_lea.vmem (%p1034_p4), %s1233_s3, %s746_s17  }
  0x16   : > { %v192_v6 = vld [vmem:[%s1058_s7] sm:$0xff]  ;;  %v193_v8 = vld [vmem:[%s1058_s7 + $0x8] sm:$0xff]  ;;  %v194_v10 = vld [vmem:[%s1058_s7 + $0x10] sm:$0xff] }
  0x17   : > { %v200_v7 = vld [vmem:[%s1058_s7 + $0x40] sm:$0xff]  ;;  %v201_v9 = vld [vmem:[%s1058_s7 + $0x48] sm:$0xff]  ;;  %777 = vmatprep.mubr.msk.f32.mxu0 %vm219_vm0, %v192_v6  ;;  %v202_v11 = vld [vmem:[%s1058_s7 + $0x50] sm:$0xff] }
  0x18   : > { %789 = vmatprep.mubr.msk.f32.mxu1 %vm219_vm0, %v200_v7  ;;  %778 = vmatmul.mubr.msk.f32.vlgmr.msra.gmra.mrb[0].mxu0 %vm219_vm0, %v193_v8  ;;  %v195_v12 = vld [vmem:[%s1058_s7 + $0x18] sm:$0xff]  ;;  %v196_v14 = vld [vmem:[%s1058_s7 + $0x20] sm:$0xff]  ;;  %v197_v16 = vld [vmem:[%s1058_s7 + $0x28] sm:$0xff] }
  0x19   : > { %790 = vmatmul.mubr.msk.f32.vlgmr.msra.gmra.mrb[0].mxu1 %vm219_vm0, %v201_v9  ;;  %780 = vmatprep.mubr.msk.f32.mxu0 %vm219_vm0, %v194_v10  ;;  %v203_v13 = vld [vmem:[%s1058_s7 + $0x58] sm:$0xff]  ;;  %v204_v15 = vld [vmem:[%s1058_s7 + $0x60] sm:$0xff]  ;;  %v205_v17 = vld [vmem:[%s1058_s7 + $0x68] sm:$0xff] }
  0x1a   : > { %792 = vmatprep.mubr.msk.f32.mxu1 %vm219_vm0, %v202_v11  ;;  %v198_v18 = vld [vmem:[%s1058_s7 + $0x30] sm:$0xff]  ;;  %v199_v20 = vld [vmem:[%s1058_s7 + $0x38] sm:$0xff] }
  0x1b   : > { %v206_v19 = vld [vmem:[%s1058_s7 + $0x70] sm:$0xff]  ;;  %v207_v21 = vld [vmem:[%s1058_s7 + $0x78] sm:$0xff] }
  0x1c   : > { %781 = vmatmul.mubr.msk.f32.gmra.mrb[2].mxu0 %vm219_vm0, %v195_v12 }
  0x1d   : > { %793 = vmatmul.mubr.msk.f32.gmra.mrb[2].mxu1 %vm219_vm0, %v203_v13  ;;  %783 = vmatprep.mubr.msk.f32.mxu0 %vm219_vm0, %v196_v14 }
  0x1e   : > { %795 = vmatprep.mubr.msk.f32.mxu1 %vm219_vm0, %v204_v15 }
  0x20   : > { %784 = vmatmul.mubr.msk.f32.gmra.mrb[4].mxu0 %vm219_vm0, %v197_v16 }
  0x21   : > { %796 = vmatmul.mubr.msk.f32.gmra.mrb[4].mxu1 %vm219_vm0, %v205_v17  ;;  %786 = vmatprep.mubr.msk.f32.mxu0 %vm219_vm0, %v198_v18 }
  0x22   : > { %798 = vmatprep.mubr.msk.f32.mxu1 %vm219_vm0, %v206_v19 }
  0x24   : > { %787 = vmatmul.mubr.msk.f32.gmra.mrb[6].mxu0 %vm219_vm0, %v199_v20 }
  0x25   : > { %799 = vmatmul.mubr.msk.f32.gmra.mrb[6].mxu1 %vm219_vm0, %v207_v21 }
  0xeb   : > { %v779_v23 = vpop.f32.mrb[0].mxu0 }
  0xec   : > { %v791_v24 = vpop.f32.mrb[0].mxu1  ;;  %v340_v25 = vadd.f32 %v779_v23, %v712_v22  ;;  %v334_v27 = vpop.f32.mrb[1].mxu0 }
  0xed   : > { %v380_v26 = vadd.f32 %v791_v24, %v712_v22  ;;  %v374_v28 = vpop.f32.mrb[1].mxu1  ;;  %v335_v29 = vadd.f32 %v712_v22, %v334_v27 }
  0xee   : > { %v375_v30 = vadd.f32 %v712_v22, %v374_v28  ;;  %415 = vst.msk [vmem:[%s1096_s14 + $0x8] sm:$0xff] %vm413_vm1, %v340_v25 }
  0xef   : > { %423 = vst.msk [vmem:[%s1096_s14 + $0x48] sm:$0xff] %vm413_vm1, %v380_v26  ;;  %414 = vst.msk [vmem:[%s1096_s14] sm:$0xff] %vm413_vm1, %v335_v29  ;;  %v782_v31 = vpop.f32.mrb[2].mxu0 }
  0xf0   : > { %422 = vst.msk [vmem:[%s1096_s14 + $0x40] sm:$0xff] %vm413_vm1, %v375_v30  ;;  %v794_v32 = vpop.f32.mrb[2].mxu1  ;;  %v350_v33 = vadd.f32 %v782_v31, %v712_v22  ;;  %v344_v35 = vpop.f32.mrb[3].mxu0 }
  0xf1   : > { %v390_v34 = vadd.f32 %v794_v32, %v712_v22  ;;  %v384_v36 = vpop.f32.mrb[3].mxu1  ;;  %v345_v37 = vadd.f32 %v712_v22, %v344_v35 }
  0xf2   : > { %v385_v38 = vadd.f32 %v712_v22, %v384_v36  ;;  %417 = vst.msk [vmem:[%s1096_s14 + $0x18] sm:$0xff] %vm413_vm1, %v350_v33 }
  0xf3   : > { %425 = vst.msk [vmem:[%s1096_s14 + $0x58] sm:$0xff] %vm413_vm1, %v390_v34  ;;  %416 = vst.msk [vmem:[%s1096_s14 + $0x10] sm:$0xff] %vm413_vm1, %v345_v37  ;;  %v785_v39 = vpop.f32.mrb[4].mxu0 }
  0xf4   : > { %424 = vst.msk [vmem:[%s1096_s14 + $0x50] sm:$0xff] %vm413_vm1, %v385_v38  ;;  %v797_v40 = vpop.f32.mrb[4].mxu1  ;;  %v360_v41 = vadd.f32 %v785_v39, %v712_v22  ;;  %v354_v43 = vpop.f32.mrb[5].mxu0 }
  0xf5   : > { %v400_v42 = vadd.f32 %v797_v40, %v712_v22  ;;  %v394_v44 = vpop.f32.mrb[5].mxu1  ;;  %v355_v45 = vadd.f32 %v712_v22, %v354_v43 }
  0xf6   : > { %v395_v46 = vadd.f32 %v712_v22, %v394_v44  ;;  %419 = vst.msk [vmem:[%s1096_s14 + $0x28] sm:$0xff] %vm413_vm1, %v360_v41  ;;  %436 = sbr.rel (!%p1034_p4) target bundleno = 302 (0x12e), region = 36 }
  0xf7   : > { %427 = vst.msk [vmem:[%s1096_s14 + $0x68] sm:$0xff] %vm413_vm1, %v400_v42  ;;  %418 = vst.msk [vmem:[%s1096_s14 + $0x20] sm:$0xff] %vm413_vm1, %v355_v45  ;;  %v788_v47 = vpop.f32.mrb[6].mxu0 }
  0xf8   : > { %426 = vst.msk [vmem:[%s1096_s14 + $0x60] sm:$0xff] %vm413_vm1, %v395_v46  ;;  %v800_v48 = vpop.f32.mrb[6].mxu1  ;;  %v370_v49 = vadd.f32 %v788_v47, %v712_v22  ;;  %v364_v51 = vpop.f32.mrb[7].mxu0 }
  0xf9   : > { %v410_v50 = vadd.f32 %v800_v48, %v712_v22  ;;  %v404_v52 = vpop.f32.mrb[7].mxu1  ;;  %v365_v53 = vadd.f32 %v712_v22, %v364_v51 }
  0xfa   : > { %v405_v54 = vadd.f32 %v712_v22, %v404_v52  ;;  %421 = vst.msk [vmem:[%s1096_s14 + $0x38] sm:$0xff] %vm413_vm1, %v370_v49 }
  0xfb   : > { %429 = vst.msk [vmem:[%s1096_s14 + $0x78] sm:$0xff] %vm413_vm1, %v410_v50  ;;  %420 = vst.msk [vmem:[%s1096_s14 + $0x30] sm:$0xff] %vm413_vm1, %v365_v53 }
  0xfc   : > { %428 = vst.msk [vmem:[%s1096_s14 + $0x70] sm:$0xff] %vm413_vm1, %v405_v54 }
  0xfd   : > { %s1242_s12 = smov (!%p439_p8, %s438_s12), 16 }
  0xfe   : > { %s731_s23 = sshll.u32 %s1242_s12, 7 }
  0xff   : > { %p734_p9 = scmp.eq.s32.totalorder %s731_s23, 0 }
 0x100   : > { %s1143_s24 = sshrl.u32 (!%p734_p9), %s1242_s12, 4 }
 0x101   : > { %447 = sbr.rel (%p734_p9) target bundleno = 302 (0x12e), region = 40  ;;  %p735_p10 = scmp.le.s32.totalorder (!%p734_p9), %s1143_s24, 0 }
 0x108   : > { %661 = sbr.rel (%p735_p10) target bundleno = 281 (0x119), region = 116  ;;  %s1235_s15 = smov (!%p735_p10), %s1137_s22 }
 0x109   : > { %s1236_s20 = smov (!%p735_p10), %s1096_s14  ;;  %s1152_s25 = smov (!%p735_p10), 0  }
 0x10a   : > { %s1154_s26 = smov (!%p735_p10), 0  }
 0x10f LB: >> { %v539_v55 = vld [vmem:[%s963_s20] sm:$0xff]  ;;  %v541_v56 = vld [vmem:[%s963_s20 + $0x8] sm:$0xff]  ;;  %v543_v57 = vld [vmem:[%s963_s20 + $0x10] sm:$0xff]  ;;  %s571_s27 = sadd.s32 1, %s967_s25  ;;  %s533_s26 = sadd.s32 1, %s971_s26   ;;  %s971_s26 = sphi %s1154_s26, %s533_s26   ;;  %s967_s25 = sphi %s1152_s25, %s1237_s25   ;;  %s963_s20 = sphi %s1236_s20, %s576_s20   ;;  %s959_s15 = sphi %s1235_s15, %s577_s15  }
 0x110   : >> { %540 = vst [vmem:[%s959_s15] sm:$0xff] %v539_v55  ;;  %542 = vst [vmem:[%s959_s15 + $0x8] sm:$0xff] %v541_v56  ;;  %v545_v58 = vld [vmem:[%s963_s20 + $0x18] sm:$0xff]  ;;  %v547_v59 = vld [vmem:[%s963_s20 + $0x20] sm:$0xff]  ;;  %p572_p11 = scmp.ge.s32.totalorder %s571_s27, %s1143_s24  ;;  %p532_p12 = scmp.ge.s32.totalorder %s533_s26, %s1143_s24 }
 0x111   : >> { %544 = vst [vmem:[%s959_s15 + $0x10] sm:$0xff] %v543_v57  ;;  %v549_v60 = vld [vmem:[%s963_s20 + $0x28] sm:$0xff]  ;;  %546 = vst [vmem:[%s959_s15 + $0x18] sm:$0xff] %v545_v58  ;;  %v551_v61 = vld [vmem:[%s963_s20 + $0x30] sm:$0xff] }
 0x112   : >> { %548 = vst [vmem:[%s959_s15 + $0x20] sm:$0xff] %v547_v59  ;;  %550 = vst [vmem:[%s959_s15 + $0x28] sm:$0xff] %v549_v60  ;;  %v553_v62 = vld [vmem:[%s963_s20 + $0x38] sm:$0xff]  ;;  %v555_v63 = vld [vmem:[%s963_s20 + $0x40] sm:$0xff]  ;;  %s1244_s27 = smov (%p572_p11, %s571_s27), 0  ;;  %535 = sbr.rel (!%p532_p12) target bundleno = 271 (0x10f), region = 122 }
 0x113   : >> { %552 = vst [vmem:[%s959_s15 + $0x30] sm:$0xff] %v551_v61  ;;  %554 = vst [vmem:[%s959_s15 + $0x38] sm:$0xff] %v553_v62  ;;  %v557_v0 = vld [vmem:[%s963_s20 + $0x48] sm:$0xff]  ;;  %v559_v1 = vld [vmem:[%s963_s20 + $0x50] sm:$0xff]  ;;  %s736_s28 = sshll.u32 %s1244_s27, 7  ;;  %s1237_s25 = smov %s1244_s27 }
 0x114   : >> { %556 = vst [vmem:[%s959_s15 + $0x40] sm:$0xff] %v555_v63  ;;  %v561_v2 = vld [vmem:[%s963_s20 + $0x58] sm:$0xff]  ;;  %558 = vst [vmem:[%s959_s15 + $0x48] sm:$0xff] %v557_v0  ;;  %v563_v3 = vld [vmem:[%s963_s20 + $0x60] sm:$0xff] }
 0x115   : >> { %560 = vst [vmem:[%s959_s15 + $0x50] sm:$0xff] %v559_v1  ;;  %562 = vst [vmem:[%s959_s15 + $0x58] sm:$0xff] %v561_v2  ;;  %v565_v4 = vld [vmem:[%s963_s20 + $0x68] sm:$0xff]  ;;  %v567_v5 = vld [vmem:[%s963_s20 + $0x70] sm:$0xff] }
 0x116   : >> { %564 = vst [vmem:[%s959_s15 + $0x60] sm:$0xff] %v563_v3  ;;  %566 = vst [vmem:[%s959_s15 + $0x68] sm:$0xff] %v565_v4  ;;  %v569_v6 = vld [vmem:[%s963_s20 + $0x78] sm:$0xff]  ;;  %s576_s20 = scalar_lea.vmem %s1096_s14, %s736_s28 [#allocation2]  }
 0x117   : >> { %568 = vst [vmem:[%s959_s15 + $0x70] sm:$0xff] %v567_v5  ;;  %570 = vst [vmem:[%s959_s15 + $0x78] sm:$0xff] %v569_v6  ;;  %s577_s15 = scalar_lea.vmem %s1137_s22, %s736_s28  }
 0x119 PF: > { %s1212_s29 = sand.u32 15, %s1242_s12   ;;  %s747_s30 = sshll.u32 %s1143_s24, 7 }
 0x11a   : > { %s582_s4 = scalar_lea.vmem %s1096_s14, %s747_s30 [#allocation2]   ;;  %s584_s5 = scalar_lea.vmem %s1137_s22, %s747_s30  }
 0x11b   : > { %p741_p13 = scmp.le.s32.totalorder %s1212_s29, 0 }
 0x11c   : > { %s973_s6 = smov (!%p741_p13), %s584_s5   ;;  %s977_s7 = smov (!%p741_p13), %s582_s4  }
 0x11d   : > { %675 = sbr.rel (%p741_p13) target bundleno = 302 (0x12e), region = 127  ;;  %s981_s8 = smov (!%p741_p13), 0  }
 0x11e   : > { %s985_s9 = smov (!%p741_p13), 0  }
 0x124 LB: >> { %v594_v7 = vld [vmem:[%s979_s7] sm:$0xff]  ;;  %s596_s10 = sadd.s32 1, %s983_s8  ;;  %s588_s9 = sadd.s32 1, %s987_s9   ;;  %s987_s9 = sphi %s985_s9, %s588_s9   ;;  %s983_s8 = sphi %s981_s8, %s982_s8   ;;  %s979_s7 = sphi %s977_s7, %s601_s7   ;;  %s975_s6 = sphi %s973_s6, %s602_s6  }
 0x125   : >> { %595 = vst [vmem:[%s975_s6] sm:$0xff] %v594_v7  ;;  %p597_p0 = scmp.ge.s32.totalorder %s596_s10, %s1212_s29  ;;  %p587_p1 = scmp.ge.s32.totalorder %s588_s9, %s1212_s29 }
 0x127   : >> { %s1246_s10 = smov (%p597_p0, %s596_s10), 0  ;;  %590 = sbr.rel (!%p587_p1) target bundleno = 292 (0x124), region = 133 }
 0x128   : >> { %s742_s11 = sshll.u32 %s1246_s10, 3  ;;  %s982_s8 = smov %s1246_s10  }
 0x129   : >> { %s601_s7 = scalar_lea.vmem %s582_s4, %s742_s11 [#allocation2]   ;;  %s602_s6 = scalar_lea.vmem %s584_s5, %s742_s11  }
 0x12e PF: > { %p10_p2 = scmp.ge.s32.totalorder %s1024_s16, 4   ;;  %s1238_s12 = smov %s951_s13 }
 0x12f   : > { %s1239_s13 = smov %s1032_s19  ;;  %s1240_s14 = smov %s1024_s16 }
 0x130   :  { %12 = sbr.rel (!%p10_p2) target bundleno = 2 (0x2), region = 144 }

</bundles_post_ra>
